<compile_context>
chip_gen: v5e
topology: v5e:2x2
jax: 0.10.0
libtpu: 0.0.40
codegen_flags: <defaults>
</compile_context>

<pallas_src>
import functools

import jax
import jax.numpy as jnp
from jax.experimental import pallas as pl
from jax.experimental.pallas import tpu as pltpu

# Bucket definitions (only len() is used by the model).
WAR_BUCKETS = list(range(8))
LEVEL_BUCKETS = list(range(5))
PA_BUCKETS = list(range(7))


def _fwd_kernel(*refs, num_layers, T, Bp):
    """Whole forward in one kernel (shapes are small -> everything in VMEM)."""
    if num_layers > 1:
        (x_ref, mask_ref, wih0_ref, wihL_ref, whh_ref, b_ref,
         w1_ref, b1_ref, w2_ref, b2_ref, out_ref, seq_ref) = refs
    else:
        (x_ref, mask_ref, wih0_ref, whh_ref, b_ref,
         w1_ref, b1_ref, w2_ref, b2_ref, out_ref, seq_ref) = refs
        wihL_ref = None

    H = seq_ref.shape[-1]
    mdt = wih0_ref.dtype                      # matmul dtype (f32 or bf16)

    def mm(a, b):
        return jnp.dot(a, b, preferred_element_type=jnp.float32)

    def recurrence(w_hh):
        # seq_ref currently holds pre[t] = x_t @ W_ih + b (f32).  Overwrite it
        # in place with h_t = tanh(pre[t] + h_{t-1} @ W_hh).  T and Bp are
        # static, so every slice is a static, sublane-aligned window and the
        # loop is fully unrolled (LLO can overlap EUP tanh with the MXU).
        w_hh_c = w_hh.astype(mdt)             # hoisted cast (no-op for f32)
        h = jnp.zeros((Bp, H), jnp.float32)
        for t in range(T):
            sl = slice(t * Bp, (t + 1) * Bp)
            h = jnp.tanh(seq_ref[sl, :] + mm(h.astype(mdt), w_hh_c))
            seq_ref[sl, :] = h

    # ---- Layer 0: hoisted input projection (one (T*Bp, I) x (I, H) matmul) --
    seq_ref[...] = mm(x_ref[...], wih0_ref[...]) + b_ref[0]
    recurrence(whh_ref[0])

    # ---- Layers >= 1: projection of the previous layer's full sequence ------
    for l in range(1, num_layers):
        seq_ref[...] = mm(seq_ref[...].astype(mdt), wihL_ref[l - 1]) + b_ref[l]
        recurrence(whh_ref[l])

    # ---- pad_packed_sequence: zero RNN outputs at positions t >= lengths[b] -
    h_seq = seq_ref[...] * mask_ref[...]                         # (T*Bp, H)

    # ---- Fused heads: (T*Bp,H)x(H,3*H2) then (T*Bp,3*H2)x(3*H2,NT) ----------
    z = mm(h_seq.astype(mdt), w1_ref[...]) + b1_ref[...]
    z = jnp.maximum(z, 0.01 * z)                                 # leaky_relu
    out_ref[...] = mm(z.astype(mdt), w2_ref[...]) + b2_ref[...]


def _full_spec(shape):
    n = len(shape)
    return pl.BlockSpec(shape, lambda i, _n=n: (0,) * _n)


def rnn_model_forward(x, lengths, params, *, num_layers,
                      matmul_dtype=jnp.float32):
    """x: (B, T, input_size) float32 (batch-first, like the PyTorch forward).
    lengths: (B,) int; max(lengths) must equal T (pad_packed output length).
    matmul_dtype: jnp.float32 (parity) or jnp.bfloat16 (v6e/v7x MXU path).
    Returns (out_war, out_level, out_pa), each (B, T, n_buckets)."""
    B, T, I = x.shape
    H = params["w_hh"].shape[-1]
    H2 = params["w_war1"].shape[-1]
    n_war = params["w_war2"].shape[-1]
    n_lvl = params["w_lvl2"].shape[-1]
    n_pa = params["w_pa2"].shape[-1]
    NT = n_war + n_lvl + n_pa

    # Pad batch to the f32 sublane granule (8) -> aligned (Bp, H) slices.
    Bp = max(8, ((B + 7) // 8) * 8)
    x_tbi = jnp.transpose(x, (1, 0, 2)).astype(jnp.float32)       # (T, B, I)
    lens = lengths.astype(jnp.int32)
    if Bp != B:
        x_tbi = jnp.pad(x_tbi, ((0, 0), (0, Bp - B), (0, 0)))
        lens = jnp.pad(lens, (0, Bp - B))                         # len-0 pads
    x_flat = x_tbi.reshape(T * Bp, I)

    # pad_packed_sequence mask, precomputed outside the kernel: (T*Bp, 1).
    mask = (jnp.arange(T, dtype=jnp.int32)[:, None] < lens[None, :])
    mask = mask.astype(jnp.float32).reshape(T * Bp, 1)

    # Fuse the three heads: concat first-layer weights, block-diag second.
    w1 = jnp.concatenate([params["w_war1"], params["w_lvl1"], params["w_pa1"]],
                         axis=1)                                  # (H, 3*H2)
    b1 = jnp.concatenate([params["b_war1"], params["b_lvl1"], params["b_pa1"]],
                         axis=1)                                  # (1, 3*H2)
    w2 = jnp.zeros((3 * H2, NT), jnp.float32)
    w2 = w2.at[0:H2, 0:n_war].set(params["w_war2"])
    w2 = w2.at[H2:2 * H2, n_war:n_war + n_lvl].set(params["w_lvl2"])
    w2 = w2.at[2 * H2:3 * H2, n_war + n_lvl:NT].set(params["w_pa2"])
    b2 = jnp.concatenate([params["b_war2"], params["b_lvl2"], params["b_pa2"]],
                         axis=1)                                  # (1, NT)

    cast = lambda a: a.astype(matmul_dtype)
    args = [cast(x_flat), mask, cast(params["w_ih0"])]
    if num_layers > 1:
        args.append(cast(params["w_ihL"]))
    args += [cast(params["w_hh"]), params["b"].astype(jnp.float32),
             cast(w1), b1.astype(jnp.float32),
             cast(w2), b2.astype(jnp.float32)]

    out = pl.pallas_call(
        functools.partial(_fwd_kernel, num_layers=num_layers, T=T, Bp=Bp),
        grid=(1,),
        in_specs=[_full_spec(a.shape) for a in args],
        out_specs=_full_spec((T * Bp, NT)),
        out_shape=jax.ShapeDtypeStruct((T * Bp, NT), jnp.float32),
        scratch_shapes=[pltpu.VMEM((T * Bp, H), jnp.float32)],
        compiler_params=pltpu.CompilerParams(dimension_semantics=("arbitrary",)),
    )(*args)

    # Back to batch-first, drop the batch padding, split the fused head.
    out = out.reshape(T, Bp, NT).transpose(1, 0, 2)[:B]           # (B, T, NT)
    return (out[..., :n_war],
            out[..., n_war:n_war + n_lvl],
            out[..., n_war + n_lvl:])


def rnn_model_reference(x, lengths, params, *, num_layers):
    """Pure-JAX reference (same math as PyTorch eval forward)."""
    B, T, _ = x.shape
    H = params["w_hh"].shape[-1]
    seq = x.astype(jnp.float32)                                   # (B, T, .)
    for l in range(num_layers):
        w_ih = params["w_ih0"] if l == 0 else params["w_ihL"][l - 1]
        w_hh = params["w_hh"][l]
        b = params["b"][l]
        h = jnp.zeros((B, H), jnp.float32)
        outs = []
        for t in range(T):
            h = jnp.tanh(seq[:, t] @ w_ih + h @ w_hh + b)
            outs.append(h)
        seq = jnp.stack(outs, axis=1)                             # (B, T, H)
    mask = (jnp.arange(T)[None, :] < lengths[:, None]).astype(jnp.float32)
    seq = seq * mask[..., None]

    def head(w1, b1, w2, b2):
        z = seq @ w1 + b1
        z = jnp.where(z >= 0, z, 0.01 * z)
        return z @ w2 + b2

    return (head(params["w_war1"], params["b_war1"], params["w_war2"], params["b_war2"]),
            head(params["w_lvl1"], params["b_lvl1"], params["w_lvl2"], params["b_lvl2"]),
            head(params["w_pa1"], params["b_pa1"], params["w_pa2"], params["b_pa2"]))


def init_params(key, input_size, hidden_size, num_layers):
    """Deterministic synthetic weights (PyTorch-style U(-1/sqrt(H), 1/sqrt(H)))."""
    H = hidden_size
    H2 = H // 2
    s = float(1.0 / (H ** 0.5))
    ks = jax.random.split(key, 16)
    u = lambda k, shape: jax.random.uniform(k, shape, jnp.float32, -s, s)
    params = dict(
        # RNN weights, stored pre-transposed as (in_features, out_features);
        # biases stored as b_ih + b_hh folded together, shape (L, 1, H).
        w_ih0=u(ks[0], (input_size, H)),
        w_hh=u(ks[2], (num_layers, H, H)),
        b=u(ks[3], (num_layers, 1, H)),
        # heads
        w_war1=u(ks[4], (H, H2)), b_war1=u(ks[5], (1, H2)),
        w_war2=u(ks[6], (H2, len(WAR_BUCKETS))), b_war2=u(ks[7], (1, len(WAR_BUCKETS))),
        w_lvl1=u(ks[8], (H, H2)), b_lvl1=u(ks[9], (1, H2)),
        w_lvl2=u(ks[10], (H2, len(LEVEL_BUCKETS))), b_lvl2=u(ks[11], (1, len(LEVEL_BUCKETS))),
        w_pa1=u(ks[12], (H, H2)), b_pa1=u(ks[13], (1, H2)),
        w_pa2=u(ks[14], (H2, len(PA_BUCKETS))), b_pa2=u(ks[15], (1, len(PA_BUCKETS))),
    )
    if num_layers > 1:
        params["w_ihL"] = u(ks[1], (num_layers - 1, H, H))
    return params


if __name__ == "__main__":
    B, T, INPUT, HIDDEN, LAYERS = 2, 8, 16, 32, 2

    key = jax.random.PRNGKey(0)
    kx, kp = jax.random.split(key)
    x = jax.random.normal(kx, (B, T, INPUT), jnp.float32)   # batch-first input
    lengths = jnp.array([T, T - 3], jnp.int32)               # max(lengths) == T

    params = init_params(kp, INPUT, HIDDEN, LAYERS)

    out_war, out_lvl, out_pa = rnn_model_forward(x, lengths, params,
                                                 num_layers=LAYERS)
    jax.block_until_ready((out_war, out_lvl, out_pa))

    assert out_war.shape == (B, T, len(WAR_BUCKETS))
    assert out_lvl.shape == (B, T, len(LEVEL_BUCKETS))
    assert out_pa.shape == (B, T, len(PA_BUCKETS))

    # Correctness check against the pure-JAX reference (loose tolerance to
    # absorb MXU vs XLA f32 matmul rounding differences).
    ref = rnn_model_reference(x, lengths, params, num_layers=LAYERS)
    for got, want in zip((out_war, out_lvl, out_pa), ref):
        assert jnp.allclose(got, want, atol=1e-2, rtol=1e-2), (
            float(jnp.max(jnp.abs(got - want))))

    print("KERNEL_OK")
</pallas_src>

<mosaic_0001>
module attributes {stable_mosaic.version = 11 : i64} {
  func.func @_fwd_kernel(%arg0: i32, %arg1: memref<64x16xf32, #tpu.memory_space<vmem>>, %arg2: memref<64x1xf32, #tpu.memory_space<vmem>>, %arg3: memref<16x32xf32, #tpu.memory_space<vmem>>, %arg4: memref<1x32x32xf32, #tpu.memory_space<vmem>>, %arg5: memref<2x32x32xf32, #tpu.memory_space<vmem>>, %arg6: memref<2x1x32xf32, #tpu.memory_space<vmem>>, %arg7: memref<32x48xf32, #tpu.memory_space<vmem>>, %arg8: memref<1x48xf32, #tpu.memory_space<vmem>>, %arg9: memref<48x20xf32, #tpu.memory_space<vmem>>, %arg10: memref<1x20xf32, #tpu.memory_space<vmem>>, %arg11: memref<64x20xf32, #tpu.memory_space<vmem>>, %arg12: memref<64x32xf32, #tpu.memory_space<vmem>>) attributes {dimension_semantics = [#tpu.dimension_semantics<arbitrary>], iteration_bounds = array<i64: 1>, scalar_prefetch = 0 : i64, scratch_operands = 1 : i64, tpu.core_type = #tpu.core_type<tc>, window_params = [{pipeline_mode = #tpu.pipeline_mode<synchronous>, transform_indices = @transform_0, window_bounds = array<i64: 64, 16>}, {pipeline_mode = #tpu.pipeline_mode<synchronous>, transform_indices = @transform_1, window_bounds = array<i64: 64, 1>}, {pipeline_mode = #tpu.pipeline_mode<synchronous>, transform_indices = @transform_2, window_bounds = array<i64: 16, 32>}, {pipeline_mode = #tpu.pipeline_mode<synchronous>, transform_indices = @transform_3, window_bounds = array<i64: 1, 32, 32>}, {pipeline_mode = #tpu.pipeline_mode<synchronous>, transform_indices = @transform_4, window_bounds = array<i64: 2, 32, 32>}, {pipeline_mode = #tpu.pipeline_mode<synchronous>, transform_indices = @transform_5, window_bounds = array<i64: 2, 1, 32>}, {pipeline_mode = #tpu.pipeline_mode<synchronous>, transform_indices = @transform_6, window_bounds = array<i64: 32, 48>}, {pipeline_mode = #tpu.pipeline_mode<synchronous>, transform_indices = @transform_7, window_bounds = array<i64: 1, 48>}, {pipeline_mode = #tpu.pipeline_mode<synchronous>, transform_indices = @transform_8, window_bounds = array<i64: 48, 20>}, {pipeline_mode = #tpu.pipeline_mode<synchronous>, transform_indices = @transform_9, window_bounds = array<i64: 1, 20>}, {pipeline_mode = #tpu.pipeline_mode<synchronous>, transform_indices = @transform_10, window_bounds = array<i64: 64, 20>}]} {
    %c0 = arith.constant 0 : index
    %c0_0 = arith.constant 0 : index
    %0 = vector.load %arg1[%c0, %c0_0] : memref<64x16xf32, #tpu.memory_space<vmem>>, vector<64x16xf32>
    %c0_1 = arith.constant 0 : index
    %c0_2 = arith.constant 0 : index
    %1 = vector.load %arg3[%c0_1, %c0_2] : memref<16x32xf32, #tpu.memory_space<vmem>>, vector<16x32xf32>
    %cst = arith.constant dense<0.000000e+00> : vector<64x32xf32>
    %2 = tpu.matmul %0, %1, %cst {dimension_numbers = #tpu.dot_dimension_numbers<[1], [0], [0], [1], [0, 0, 1, 1], [], []>} : vector<64x16xf32>, vector<16x32xf32>, vector<64x32xf32> -> vector<64x32xf32>
    %c0_3 = arith.constant 0 : index
    %c0_4 = arith.constant 0 : index
    %c0_5 = arith.constant 0 : index
    %3 = vector.load %arg6[%c0_3, %c0_4, %c0_5] : memref<2x1x32xf32, #tpu.memory_space<vmem>>, vector<1x1x32xf32>
    %4 = vector.shape_cast %3 : vector<1x1x32xf32> to vector<1x32xf32>
    %5 = vector.broadcast %4 : vector<1x32xf32> to vector<64x32xf32>
    %6 = arith.addf %2, %5 : vector<64x32xf32>
    %c0_6 = arith.constant 0 : index
    %c0_7 = arith.constant 0 : index
    %7 = vector.load %arg12[%c0_6, %c0_7] : memref<64x32xf32, #tpu.memory_space<vmem>>, vector<64x32xf32>
    tpu.vector_store %arg12[%c0_6, %c0_7], %6 {strides = array<i32>} : memref<64x32xf32, #tpu.memory_space<vmem>>, vector<64x32xf32>,
    %c0_8 = arith.constant 0 : index
    %c0_9 = arith.constant 0 : index
    %c0_10 = arith.constant 0 : index
    %8 = vector.load %arg5[%c0_8, %c0_9, %c0_10] : memref<2x32x32xf32, #tpu.memory_space<vmem>>, vector<1x32x32xf32>
    %9 = vector.shape_cast %8 : vector<1x32x32xf32> to vector<32x32xf32>
    %cst_11 = arith.constant 0.000000e+00 : f32
    %10 = vector.broadcast %cst_11 : f32 to vector<8x32xf32>
    %c0_12 = arith.constant 0 : index
    %c0_13 = arith.constant 0 : index
    %11 = vector.load %arg12[%c0_12, %c0_13] : memref<64x32xf32, #tpu.memory_space<vmem>>, vector<8x32xf32>
    %cst_14 = arith.constant dense<0.000000e+00> : vector<8x32xf32>
    %12 = tpu.matmul %10, %9, %cst_14 {dimension_numbers = #tpu.dot_dimension_numbers<[1], [0], [0], [1], [0, 0, 1, 1], [], []>} : vector<8x32xf32>, vector<32x32xf32>, vector<8x32xf32> -> vector<8x32xf32>
    %13 = arith.addf %11, %12 : vector<8x32xf32>
    %14 = math.tanh %13 : vector<8x32xf32>
    %c0_15 = arith.constant 0 : index
    %c0_16 = arith.constant 0 : index
    %15 = vector.load %arg12[%c0_15, %c0_16] : memref<64x32xf32, #tpu.memory_space<vmem>>, vector<8x32xf32>
    tpu.vector_store %arg12[%c0_15, %c0_16], %14 {strides = array<i32>} : memref<64x32xf32, #tpu.memory_space<vmem>>, vector<8x32xf32>,
    %c8 = arith.constant 8 : index
    %c0_17 = arith.constant 0 : index
    %16 = vector.load %arg12[%c8, %c0_17] : memref<64x32xf32, #tpu.memory_space<vmem>>, vector<8x32xf32>
    %cst_18 = arith.constant dense<0.000000e+00> : vector<8x32xf32>
    %17 = tpu.matmul %14, %9, %cst_18 {dimension_numbers = #tpu.dot_dimension_numbers<[1], [0], [0], [1], [0, 0, 1, 1], [], []>} : vector<8x32xf32>, vector<32x32xf32>, vector<8x32xf32> -> vector<8x32xf32>
    %18 = arith.addf %16, %17 : vector<8x32xf32>
    %19 = math.tanh %18 : vector<8x32xf32>
    %c8_19 = arith.constant 8 : index
    %c0_20 = arith.constant 0 : index
    %20 = vector.load %arg12[%c8_19, %c0_20] : memref<64x32xf32, #tpu.memory_space<vmem>>, vector<8x32xf32>
    tpu.vector_store %arg12[%c8_19, %c0_20], %19 {strides = array<i32>} : memref<64x32xf32, #tpu.memory_space<vmem>>, vector<8x32xf32>,
    %c16 = arith.constant 16 : index
    %c0_21 = arith.constant 0 : index
    %21 = vector.load %arg12[%c16, %c0_21] : memref<64x32xf32, #tpu.memory_space<vmem>>, vector<8x32xf32>
    %cst_22 = arith.constant dense<0.000000e+00> : vector<8x32xf32>
    %22 = tpu.matmul %19, %9, %cst_22 {dimension_numbers = #tpu.dot_dimension_numbers<[1], [0], [0], [1], [0, 0, 1, 1], [], []>} : vector<8x32xf32>, vector<32x32xf32>, vector<8x32xf32> -> vector<8x32xf32>
    %23 = arith.addf %21, %22 : vector<8x32xf32>
    %24 = math.tanh %23 : vector<8x32xf32>
    %c16_23 = arith.constant 16 : index
    %c0_24 = arith.constant 0 : index
    %25 = vector.load %arg12[%c16_23, %c0_24] : memref<64x32xf32, #tpu.memory_space<vmem>>, vector<8x32xf32>
    tpu.vector_store %arg12[%c16_23, %c0_24], %24 {strides = array<i32>} : memref<64x32xf32, #tpu.memory_space<vmem>>, vector<8x32xf32>,
    %c24 = arith.constant 24 : index
    %c0_25 = arith.constant 0 : index
    %26 = vector.load %arg12[%c24, %c0_25] : memref<64x32xf32, #tpu.memory_space<vmem>>, vector<8x32xf32>
    %cst_26 = arith.constant dense<0.000000e+00> : vector<8x32xf32>
    %27 = tpu.matmul %24, %9, %cst_26 {dimension_numbers = #tpu.dot_dimension_numbers<[1], [0], [0], [1], [0, 0, 1, 1], [], []>} : vector<8x32xf32>, vector<32x32xf32>, vector<8x32xf32> -> vector<8x32xf32>
    %28 = arith.addf %26, %27 : vector<8x32xf32>
    %29 = math.tanh %28 : vector<8x32xf32>
    %c24_27 = arith.constant 24 : index
    %c0_28 = arith.constant 0 : index
    %30 = vector.load %arg12[%c24_27, %c0_28] : memref<64x32xf32, #tpu.memory_space<vmem>>, vector<8x32xf32>
    tpu.vector_store %arg12[%c24_27, %c0_28], %29 {strides = array<i32>} : memref<64x32xf32, #tpu.memory_space<vmem>>, vector<8x32xf32>,
    %c32 = arith.constant 32 : index
    %c0_29 = arith.constant 0 : index
    %31 = vector.load %arg12[%c32, %c0_29] : memref<64x32xf32, #tpu.memory_space<vmem>>, vector<8x32xf32>
    %cst_30 = arith.constant dense<0.000000e+00> : vector<8x32xf32>
    %32 = tpu.matmul %29, %9, %cst_30 {dimension_numbers = #tpu.dot_dimension_numbers<[1], [0], [0], [1], [0, 0, 1, 1], [], []>} : vector<8x32xf32>, vector<32x32xf32>, vector<8x32xf32> -> vector<8x32xf32>
    %33 = arith.addf %31, %32 : vector<8x32xf32>
    %34 = math.tanh %33 : vector<8x32xf32>
    %c32_31 = arith.constant 32 : index
    %c0_32 = arith.constant 0 : index
    %35 = vector.load %arg12[%c32_31, %c0_32] : memref<64x32xf32, #tpu.memory_space<vmem>>, vector<8x32xf32>
    tpu.vector_store %arg12[%c32_31, %c0_32], %34 {strides = array<i32>} : memref<64x32xf32, #tpu.memory_space<vmem>>, vector<8x32xf32>,
    %c40 = arith.constant 40 : index
    %c0_33 = arith.constant 0 : index
    %36 = vector.load %arg12[%c40, %c0_33] : memref<64x32xf32, #tpu.memory_space<vmem>>, vector<8x32xf32>
    %cst_34 = arith.constant dense<0.000000e+00> : vector<8x32xf32>
    %37 = tpu.matmul %34, %9, %cst_34 {dimension_numbers = #tpu.dot_dimension_numbers<[1], [0], [0], [1], [0, 0, 1, 1], [], []>} : vector<8x32xf32>, vector<32x32xf32>, vector<8x32xf32> -> vector<8x32xf32>
    %38 = arith.addf %36, %37 : vector<8x32xf32>
    %39 = math.tanh %38 : vector<8x32xf32>
    %c40_35 = arith.constant 40 : index
    %c0_36 = arith.constant 0 : index
    %40 = vector.load %arg12[%c40_35, %c0_36] : memref<64x32xf32, #tpu.memory_space<vmem>>, vector<8x32xf32>
    tpu.vector_store %arg12[%c40_35, %c0_36], %39 {strides = array<i32>} : memref<64x32xf32, #tpu.memory_space<vmem>>, vector<8x32xf32>,
    %c48 = arith.constant 48 : index
    %c0_37 = arith.constant 0 : index
    %41 = vector.load %arg12[%c48, %c0_37] : memref<64x32xf32, #tpu.memory_space<vmem>>, vector<8x32xf32>
    %cst_38 = arith.constant dense<0.000000e+00> : vector<8x32xf32>
    %42 = tpu.matmul %39, %9, %cst_38 {dimension_numbers = #tpu.dot_dimension_numbers<[1], [0], [0], [1], [0, 0, 1, 1], [], []>} : vector<8x32xf32>, vector<32x32xf32>, vector<8x32xf32> -> vector<8x32xf32>
    %43 = arith.addf %41, %42 : vector<8x32xf32>
    %44 = math.tanh %43 : vector<8x32xf32>
    %c48_39 = arith.constant 48 : index
    %c0_40 = arith.constant 0 : index
    %45 = vector.load %arg12[%c48_39, %c0_40] : memref<64x32xf32, #tpu.memory_space<vmem>>, vector<8x32xf32>
    tpu.vector_store %arg12[%c48_39, %c0_40], %44 {strides = array<i32>} : memref<64x32xf32, #tpu.memory_space<vmem>>, vector<8x32xf32>,
    %c56 = arith.constant 56 : index
    %c0_41 = arith.constant 0 : index
    %46 = vector.load %arg12[%c56, %c0_41] : memref<64x32xf32, #tpu.memory_space<vmem>>, vector<8x32xf32>
    %cst_42 = arith.constant dense<0.000000e+00> : vector<8x32xf32>
    %47 = tpu.matmul %44, %9, %cst_42 {dimension_numbers = #tpu.dot_dimension_numbers<[1], [0], [0], [1], [0, 0, 1, 1], [], []>} : vector<8x32xf32>, vector<32x32xf32>, vector<8x32xf32> -> vector<8x32xf32>
    %48 = arith.addf %46, %47 : vector<8x32xf32>
    %49 = math.tanh %48 : vector<8x32xf32>
    %c56_43 = arith.constant 56 : index
    %c0_44 = arith.constant 0 : index
    %50 = vector.load %arg12[%c56_43, %c0_44] : memref<64x32xf32, #tpu.memory_space<vmem>>, vector<8x32xf32>
    tpu.vector_store %arg12[%c56_43, %c0_44], %49 {strides = array<i32>} : memref<64x32xf32, #tpu.memory_space<vmem>>, vector<8x32xf32>,
    %c0_45 = arith.constant 0 : index
    %c0_46 = arith.constant 0 : index
    %51 = vector.load %arg12[%c0_45, %c0_46] : memref<64x32xf32, #tpu.memory_space<vmem>>, vector<64x32xf32>
    %c0_47 = arith.constant 0 : index
    %c0_48 = arith.constant 0 : index
    %c0_49 = arith.constant 0 : index
    %52 = vector.load %arg4[%c0_47, %c0_48, %c0_49] : memref<1x32x32xf32, #tpu.memory_space<vmem>>, vector<1x32x32xf32>
    %53 = vector.shape_cast %52 : vector<1x32x32xf32> to vector<32x32xf32>
    %cst_50 = arith.constant dense<0.000000e+00> : vector<64x32xf32>
    %54 = tpu.matmul %51, %53, %cst_50 {dimension_numbers = #tpu.dot_dimension_numbers<[1], [0], [0], [1], [0, 0, 1, 1], [], []>} : vector<64x32xf32>, vector<32x32xf32>, vector<64x32xf32> -> vector<64x32xf32>
    %c1 = arith.constant 1 : index
    %c0_51 = arith.constant 0 : index
    %c0_52 = arith.constant 0 : index
    %55 = vector.load %arg6[%c1, %c0_51, %c0_52] : memref<2x1x32xf32, #tpu.memory_space<vmem>>, vector<1x1x32xf32>
    %56 = vector.shape_cast %55 : vector<1x1x32xf32> to vector<1x32xf32>
    %57 = vector.broadcast %56 : vector<1x32xf32> to vector<64x32xf32>
    %58 = arith.addf %54, %57 : vector<64x32xf32>
    %c0_53 = arith.constant 0 : index
    %c0_54 = arith.constant 0 : index
    %59 = vector.load %arg12[%c0_53, %c0_54] : memref<64x32xf32, #tpu.memory_space<vmem>>, vector<64x32xf32>
    tpu.vector_store %arg12[%c0_53, %c0_54], %58 {strides = array<i32>} : memref<64x32xf32, #tpu.memory_space<vmem>>, vector<64x32xf32>,
    %c1_55 = arith.constant 1 : index
    %c0_56 = arith.constant 0 : index
    %c0_57 = arith.constant 0 : index
    %60 = vector.load %arg5[%c1_55, %c0_56, %c0_57] : memref<2x32x32xf32, #tpu.memory_space<vmem>>, vector<1x32x32xf32>
    %61 = vector.shape_cast %60 : vector<1x32x32xf32> to vector<32x32xf32>
    %cst_58 = arith.constant 0.000000e+00 : f32
    %62 = vector.broadcast %cst_58 : f32 to vector<8x32xf32>
    %c0_59 = arith.constant 0 : index
    %c0_60 = arith.constant 0 : index
    %63 = vector.load %arg12[%c0_59, %c0_60] : memref<64x32xf32, #tpu.memory_space<vmem>>, vector<8x32xf32>
    %cst_61 = arith.constant dense<0.000000e+00> : vector<8x32xf32>
    %64 = tpu.matmul %62, %61, %cst_61 {dimension_numbers = #tpu.dot_dimension_numbers<[1], [0], [0], [1], [0, 0, 1, 1], [], []>} : vector<8x32xf32>, vector<32x32xf32>, vector<8x32xf32> -> vector<8x32xf32>
    %65 = arith.addf %63, %64 : vector<8x32xf32>
    %66 = math.tanh %65 : vector<8x32xf32>
    %c0_62 = arith.constant 0 : index
    %c0_63 = arith.constant 0 : index
    %67 = vector.load %arg12[%c0_62, %c0_63] : memref<64x32xf32, #tpu.memory_space<vmem>>, vector<8x32xf32>
    tpu.vector_store %arg12[%c0_62, %c0_63], %66 {strides = array<i32>} : memref<64x32xf32, #tpu.memory_space<vmem>>, vector<8x32xf32>,
    %c8_64 = arith.constant 8 : index
    %c0_65 = arith.constant 0 : index
    %68 = vector.load %arg12[%c8_64, %c0_65] : memref<64x32xf32, #tpu.memory_space<vmem>>, vector<8x32xf32>
    %cst_66 = arith.constant dense<0.000000e+00> : vector<8x32xf32>
    %69 = tpu.matmul %66, %61, %cst_66 {dimension_numbers = #tpu.dot_dimension_numbers<[1], [0], [0], [1], [0, 0, 1, 1], [], []>} : vector<8x32xf32>, vector<32x32xf32>, vector<8x32xf32> -> vector<8x32xf32>
    %70 = arith.addf %68, %69 : vector<8x32xf32>
    %71 = math.tanh %70 : vector<8x32xf32>
    %c8_67 = arith.constant 8 : index
    %c0_68 = arith.constant 0 : index
    %72 = vector.load %arg12[%c8_67, %c0_68] : memref<64x32xf32, #tpu.memory_space<vmem>>, vector<8x32xf32>
    tpu.vector_store %arg12[%c8_67, %c0_68], %71 {strides = array<i32>} : memref<64x32xf32, #tpu.memory_space<vmem>>, vector<8x32xf32>,
    %c16_69 = arith.constant 16 : index
    %c0_70 = arith.constant 0 : index
    %73 = vector.load %arg12[%c16_69, %c0_70] : memref<64x32xf32, #tpu.memory_space<vmem>>, vector<8x32xf32>
    %cst_71 = arith.constant dense<0.000000e+00> : vector<8x32xf32>
    %74 = tpu.matmul %71, %61, %cst_71 {dimension_numbers = #tpu.dot_dimension_numbers<[1], [0], [0], [1], [0, 0, 1, 1], [], []>} : vector<8x32xf32>, vector<32x32xf32>, vector<8x32xf32> -> vector<8x32xf32>
    %75 = arith.addf %73, %74 : vector<8x32xf32>
    %76 = math.tanh %75 : vector<8x32xf32>
    %c16_72 = arith.constant 16 : index
    %c0_73 = arith.constant 0 : index
    %77 = vector.load %arg12[%c16_72, %c0_73] : memref<64x32xf32, #tpu.memory_space<vmem>>, vector<8x32xf32>
    tpu.vector_store %arg12[%c16_72, %c0_73], %76 {strides = array<i32>} : memref<64x32xf32, #tpu.memory_space<vmem>>, vector<8x32xf32>,
    %c24_74 = arith.constant 24 : index
    %c0_75 = arith.constant 0 : index
    %78 = vector.load %arg12[%c24_74, %c0_75] : memref<64x32xf32, #tpu.memory_space<vmem>>, vector<8x32xf32>
    %cst_76 = arith.constant dense<0.000000e+00> : vector<8x32xf32>
    %79 = tpu.matmul %76, %61, %cst_76 {dimension_numbers = #tpu.dot_dimension_numbers<[1], [0], [0], [1], [0, 0, 1, 1], [], []>} : vector<8x32xf32>, vector<32x32xf32>, vector<8x32xf32> -> vector<8x32xf32>
    %80 = arith.addf %78, %79 : vector<8x32xf32>
    %81 = math.tanh %80 : vector<8x32xf32>
    %c24_77 = arith.constant 24 : index
    %c0_78 = arith.constant 0 : index
    %82 = vector.load %arg12[%c24_77, %c0_78] : memref<64x32xf32, #tpu.memory_space<vmem>>, vector<8x32xf32>
    tpu.vector_store %arg12[%c24_77, %c0_78], %81 {strides = array<i32>} : memref<64x32xf32, #tpu.memory_space<vmem>>, vector<8x32xf32>,
    %c32_79 = arith.constant 32 : index
    %c0_80 = arith.constant 0 : index
    %83 = vector.load %arg12[%c32_79, %c0_80] : memref<64x32xf32, #tpu.memory_space<vmem>>, vector<8x32xf32>
    %cst_81 = arith.constant dense<0.000000e+00> : vector<8x32xf32>
    %84 = tpu.matmul %81, %61, %cst_81 {dimension_numbers = #tpu.dot_dimension_numbers<[1], [0], [0], [1], [0, 0, 1, 1], [], []>} : vector<8x32xf32>, vector<32x32xf32>, vector<8x32xf32> -> vector<8x32xf32>
    %85 = arith.addf %83, %84 : vector<8x32xf32>
    %86 = math.tanh %85 : vector<8x32xf32>
    %c32_82 = arith.constant 32 : index
    %c0_83 = arith.constant 0 : index
    %87 = vector.load %arg12[%c32_82, %c0_83] : memref<64x32xf32, #tpu.memory_space<vmem>>, vector<8x32xf32>
    tpu.vector_store %arg12[%c32_82, %c0_83], %86 {strides = array<i32>} : memref<64x32xf32, #tpu.memory_space<vmem>>, vector<8x32xf32>,
    %c40_84 = arith.constant 40 : index
    %c0_85 = arith.constant 0 : index
    %88 = vector.load %arg12[%c40_84, %c0_85] : memref<64x32xf32, #tpu.memory_space<vmem>>, vector<8x32xf32>
    %cst_86 = arith.constant dense<0.000000e+00> : vector<8x32xf32>
    %89 = tpu.matmul %86, %61, %cst_86 {dimension_numbers = #tpu.dot_dimension_numbers<[1], [0], [0], [1], [0, 0, 1, 1], [], []>} : vector<8x32xf32>, vector<32x32xf32>, vector<8x32xf32> -> vector<8x32xf32>
    %90 = arith.addf %88, %89 : vector<8x32xf32>
    %91 = math.tanh %90 : vector<8x32xf32>
    %c40_87 = arith.constant 40 : index
    %c0_88 = arith.constant 0 : index
    %92 = vector.load %arg12[%c40_87, %c0_88] : memref<64x32xf32, #tpu.memory_space<vmem>>, vector<8x32xf32>
    tpu.vector_store %arg12[%c40_87, %c0_88], %91 {strides = array<i32>} : memref<64x32xf32, #tpu.memory_space<vmem>>, vector<8x32xf32>,
    %c48_89 = arith.constant 48 : index
    %c0_90 = arith.constant 0 : index
    %93 = vector.load %arg12[%c48_89, %c0_90] : memref<64x32xf32, #tpu.memory_space<vmem>>, vector<8x32xf32>
    %cst_91 = arith.constant dense<0.000000e+00> : vector<8x32xf32>
    %94 = tpu.matmul %91, %61, %cst_91 {dimension_numbers = #tpu.dot_dimension_numbers<[1], [0], [0], [1], [0, 0, 1, 1], [], []>} : vector<8x32xf32>, vector<32x32xf32>, vector<8x32xf32> -> vector<8x32xf32>
    %95 = arith.addf %93, %94 : vector<8x32xf32>
    %96 = math.tanh %95 : vector<8x32xf32>
    %c48_92 = arith.constant 48 : index
    %c0_93 = arith.constant 0 : index
    %97 = vector.load %arg12[%c48_92, %c0_93] : memref<64x32xf32, #tpu.memory_space<vmem>>, vector<8x32xf32>
    tpu.vector_store %arg12[%c48_92, %c0_93], %96 {strides = array<i32>} : memref<64x32xf32, #tpu.memory_space<vmem>>, vector<8x32xf32>,
    %c56_94 = arith.constant 56 : index
    %c0_95 = arith.constant 0 : index
    %98 = vector.load %arg12[%c56_94, %c0_95] : memref<64x32xf32, #tpu.memory_space<vmem>>, vector<8x32xf32>
    %cst_96 = arith.constant dense<0.000000e+00> : vector<8x32xf32>
    %99 = tpu.matmul %96, %61, %cst_96 {dimension_numbers = #tpu.dot_dimension_numbers<[1], [0], [0], [1], [0, 0, 1, 1], [], []>} : vector<8x32xf32>, vector<32x32xf32>, vector<8x32xf32> -> vector<8x32xf32>
    %100 = arith.addf %98, %99 : vector<8x32xf32>
    %101 = math.tanh %100 : vector<8x32xf32>
    %c56_97 = arith.constant 56 : index
    %c0_98 = arith.constant 0 : index
    %102 = vector.load %arg12[%c56_97, %c0_98] : memref<64x32xf32, #tpu.memory_space<vmem>>, vector<8x32xf32>
    tpu.vector_store %arg12[%c56_97, %c0_98], %101 {strides = array<i32>} : memref<64x32xf32, #tpu.memory_space<vmem>>, vector<8x32xf32>,
    %c0_99 = arith.constant 0 : index
    %c0_100 = arith.constant 0 : index
    %103 = vector.load %arg12[%c0_99, %c0_100] : memref<64x32xf32, #tpu.memory_space<vmem>>, vector<64x32xf32>
    %c0_101 = arith.constant 0 : index
    %c0_102 = arith.constant 0 : index
    %104 = vector.load %arg2[%c0_101, %c0_102] : memref<64x1xf32, #tpu.memory_space<vmem>>, vector<64x1xf32>
    %105 = vector.broadcast %104 : vector<64x1xf32> to vector<64x32xf32>
    %106 = arith.mulf %103, %105 : vector<64x32xf32>
    %c0_103 = arith.constant 0 : index
    %c0_104 = arith.constant 0 : index
    %107 = vector.load %arg7[%c0_103, %c0_104] : memref<32x48xf32, #tpu.memory_space<vmem>>, vector<32x48xf32>
    %cst_105 = arith.constant dense<0.000000e+00> : vector<64x48xf32>
    %108 = tpu.matmul %106, %107, %cst_105 {dimension_numbers = #tpu.dot_dimension_numbers<[1], [0], [0], [1], [0, 0, 1, 1], [], []>} : vector<64x32xf32>, vector<32x48xf32>, vector<64x48xf32> -> vector<64x48xf32>
    %c0_106 = arith.constant 0 : index
    %c0_107 = arith.constant 0 : index
    %109 = vector.load %arg8[%c0_106, %c0_107] : memref<1x48xf32, #tpu.memory_space<vmem>>, vector<1x48xf32>
    %110 = vector.broadcast %109 : vector<1x48xf32> to vector<64x48xf32>
    %111 = arith.addf %108, %110 : vector<64x48xf32>
    %cst_108 = arith.constant 0.00999999977 : f32
    %112 = vector.broadcast %cst_108 : f32 to vector<64x48xf32>
    %113 = arith.mulf %112, %111 : vector<64x48xf32>
    %114 = arith.maximumf %111, %113 : vector<64x48xf32>
    %c0_109 = arith.constant 0 : index
    %c0_110 = arith.constant 0 : index
    %115 = vector.load %arg9[%c0_109, %c0_110] : memref<48x20xf32, #tpu.memory_space<vmem>>, vector<48x20xf32>
    %cst_111 = arith.constant dense<0.000000e+00> : vector<64x20xf32>
    %116 = tpu.matmul %114, %115, %cst_111 {dimension_numbers = #tpu.dot_dimension_numbers<[1], [0], [0], [1], [0, 0, 1, 1], [], []>} : vector<64x48xf32>, vector<48x20xf32>, vector<64x20xf32> -> vector<64x20xf32>
    %c0_112 = arith.constant 0 : index
    %c0_113 = arith.constant 0 : index
    %117 = vector.load %arg10[%c0_112, %c0_113] : memref<1x20xf32, #tpu.memory_space<vmem>>, vector<1x20xf32>
    %118 = vector.broadcast %117 : vector<1x20xf32> to vector<64x20xf32>
    %119 = arith.addf %116, %118 : vector<64x20xf32>
    %c0_114 = arith.constant 0 : index
    %c0_115 = arith.constant 0 : index
    %120 = vector.load %arg11[%c0_114, %c0_115] : memref<64x20xf32, #tpu.memory_space<vmem>>, vector<64x20xf32>
    tpu.vector_store %arg11[%c0_114, %c0_115], %119 {strides = array<i32>} : memref<64x20xf32, #tpu.memory_space<vmem>>, vector<64x20xf32>,
    return
  }
  func.func @transform_0(%arg0: i32) -> (i32, i32) {
    %c0_i32 = arith.constant 0 : i32
    %c0_i32_0 = arith.constant 0 : i32
    %c0_i32_1 = arith.constant 0 : i32
    return %c0_i32, %c0_i32_0 : i32, i32
  }
  func.func @transform_1(%arg0: i32) -> (i32, i32) {
    %c0_i32 = arith.constant 0 : i32
    %c0_i32_0 = arith.constant 0 : i32
    %c0_i32_1 = arith.constant 0 : i32
    return %c0_i32, %c0_i32_0 : i32, i32
  }
  func.func @transform_2(%arg0: i32) -> (i32, i32) {
    %c0_i32 = arith.constant 0 : i32
    %c0_i32_0 = arith.constant 0 : i32
    %c0_i32_1 = arith.constant 0 : i32
    return %c0_i32, %c0_i32_0 : i32, i32
  }
  func.func @transform_3(%arg0: i32) -> (i32, i32, i32) {
    %c0_i32 = arith.constant 0 : i32
    %c0_i32_0 = arith.constant 0 : i32
    %c0_i32_1 = arith.constant 0 : i32
    %c0_i32_2 = arith.constant 0 : i32
    return %c0_i32, %c0_i32_0, %c0_i32_1 : i32, i32, i32
  }
  func.func @transform_4(%arg0: i32) -> (i32, i32, i32) {
    %c0_i32 = arith.constant 0 : i32
    %c0_i32_0 = arith.constant 0 : i32
    %c0_i32_1 = arith.constant 0 : i32
    %c0_i32_2 = arith.constant 0 : i32
    return %c0_i32, %c0_i32_0, %c0_i32_1 : i32, i32, i32
  }
  func.func @transform_5(%arg0: i32) -> (i32, i32, i32) {
    %c0_i32 = arith.constant 0 : i32
    %c0_i32_0 = arith.constant 0 : i32
    %c0_i32_1 = arith.constant 0 : i32
    %c0_i32_2 = arith.constant 0 : i32
    return %c0_i32, %c0_i32_0, %c0_i32_1 : i32, i32, i32
  }
  func.func @transform_6(%arg0: i32) -> (i32, i32) {
    %c0_i32 = arith.constant 0 : i32
    %c0_i32_0 = arith.constant 0 : i32
    %c0_i32_1 = arith.constant 0 : i32
    return %c0_i32, %c0_i32_0 : i32, i32
  }
  func.func @transform_7(%arg0: i32) -> (i32, i32) {
    %c0_i32 = arith.constant 0 : i32
    %c0_i32_0 = arith.constant 0 : i32
    %c0_i32_1 = arith.constant 0 : i32
    return %c0_i32, %c0_i32_0 : i32, i32
  }
  func.func @transform_8(%arg0: i32) -> (i32, i32) {
    %c0_i32 = arith.constant 0 : i32
    %c0_i32_0 = arith.constant 0 : i32
    %c0_i32_1 = arith.constant 0 : i32
    return %c0_i32, %c0_i32_0 : i32, i32
  }
  func.func @transform_9(%arg0: i32) -> (i32, i32) {
    %c0_i32 = arith.constant 0 : i32
    %c0_i32_0 = arith.constant 0 : i32
    %c0_i32_1 = arith.constant 0 : i32
    return %c0_i32, %c0_i32_0 : i32, i32
  }
  func.func @transform_10(%arg0: i32) -> (i32, i32) {
    %c0_i32 = arith.constant 0 : i32
    %c0_i32_0 = arith.constant 0 : i32
    %c0_i32_1 = arith.constant 0 : i32
    return %c0_i32, %c0_i32_0 : i32, i32
  }
}

</mosaic_0001>

<bundles_post_ra>
// kernel: tpu_custom_call.1
= control target key start
LH: loop header
LB: loop body
LE: loop exit
PB: predicated region body
PF: predicated region fallthrough
CT: control target
= control target key end

     0   :  { %vm49_vm0 = vcmask 130048   ;;  %v992_v7 = vmov 0.0   ;;  %vm115_vm1 = vcmask 261120   ;;  %vm815_vm2 = vcmask 392192   ;;  %s1389_s2 = inlined_call_operand.vmem [shape: f32[16,32], index: 2, kind: input, shape index: {}]   ;;  %s1390_s0 = inlined_call_operand.vmem [shape: f32[64,16], index: 0, kind: input, shape index: {}]   ;;  %s1391_s4 = inlined_call_operand.vmem [shape: f32[2,32,32], index: 4, kind: input, shape index: {}]   ;;  %s1392_s5 = inlined_call_operand.vmem [shape: f32[2,1,32], index: 5, kind: input, shape index: {}]   ;;  %s1393_s3 = inlined_call_operand.vmem [shape: f32[1,32,32], index: 3, kind: input, shape index: {}]   ;;  %s1394_s1 = inlined_call_operand.vmem [shape: f32[64,1], index: 1, kind: input, shape index: {}]   ;;  %s1395_s6 = inlined_call_operand.vmem [shape: f32[32,48], index: 6, kind: input, shape index: {}]   ;;  %s1396_s7 = inlined_call_operand.vmem [shape: f32[1,48], index: 7, kind: input, shape index: {}]   ;;  %s1397_s8 = inlined_call_operand.vmem [shape: f32[48,20], index: 8, kind: input, shape index: {}]   ;;  %s1398_s9 = inlined_call_operand.vmem [shape: f32[1,20], index: 9, kind: input, shape index: {}]   ;;  %s1399_s10 = inlined_call_operand.vmem [shape: f32[64,20], index: 10, kind: output, shape index: {}]  }
   0x1   :  { %v44_v0 = vld [vmem:[%s1389_s2 + $0x8] sm:$0xff]  ;;  %v43_v1 = vld [vmem:[%s1389_s2] sm:$0xff]  ;;  %v127_v3 = vld [vmem:[%s1391_s4 + $0x18] sm:$0xff]  ;;  %vm881_vm3 = vcmask 162816  }
   0x2   :  { %88 = vmatpush.msra.mxu2 %v44_v0  ;;  %v35_v2 = vld [vmem:[%s1390_s0] sm:$0xff]  ;;  %v126_v4 = vld [vmem:[%s1391_s4 + $0x10] sm:$0xff]  ;;  %945 = vmatpush.msra.mxu3 %v44_v0  ;;  %v125_v5 = vld [vmem:[%s1391_s4 + $0x8] sm:$0xff] }
   0x3   :  { %144 = vmatpush.msra.mxu1 %v127_v3  ;;  %171 = vmatpush.msra.mxu0 %v127_v3  ;;  %v124_v6 = vld [vmem:[%s1391_s4] sm:$0xff]  ;;  %v36_v8 = vld [vmem:[%s1390_s0 + $0x8] sm:$0xff]  ;;  %v41_v16 = vld [vmem:[%s1390_s0 + $0x30] sm:$0xff] }
   0x4   :  { %89 = vmatpush.msra.mxu2 %v43_v1  ;;  %946 = vmatpush.msra.mxu3 %v43_v1  ;;  %v1079_v9 = vld [vmem:[%s1392_s5] ss:$0 sm:$0xff]  ;;  %v37_v17 = vld [vmem:[%s1390_s0 + $0x10] sm:$0xff]  ;;  %v42_v20 = vld [vmem:[%s1390_s0 + $0x38] sm:$0xff] }
   0x5   :  { %894 = vmatmul.msk.f32.vlgmr.msra.gmra.mxu2 %vm49_vm0, %v35_v2  ;;  %145 = vmatpush.msra.mxu1 %v126_v4  ;;  %v38_v29 = vld [vmem:[%s1390_s0 + $0x18] sm:$0xff]  ;;  %v39_v36 = vld [vmem:[%s1390_s0 + $0x20] sm:$0xff]  ;;  %v40_v39 = vld [vmem:[%s1390_s0 + $0x28] sm:$0xff] }
   0x6   :  { %172 = vmatpush.msra.mxu0 %v126_v4  ;;  %198 = vmatpush.msrb.mxu3 %v127_v3  ;;  %v355_v48 = vld [vmem:[%s1393_s3 + $0x18] sm:$0xff]  ;;  %v354_v49 = vld [vmem:[%s1393_s3 + $0x10] sm:$0xff]  ;;  %v353_v50 = vld [vmem:[%s1393_s3 + $0x8] sm:$0xff] }
   0x7   :  { %146 = vmatpush.msra.mxu1 %v125_v5  ;;  %252 = vmatpush.msrb.mxu2 %v127_v3  ;;  %v352_v51 = vld [vmem:[%s1393_s3] sm:$0xff]  ;;  %v1151_v61 = vld [vmem:[%s1391_s4 + $0x38] sm:$0xff]  ;;  %v1157_v62 = vld [vmem:[%s1391_s4 + $0x30] sm:$0xff] }
   0x8   :  { %173 = vmatpush.msra.mxu0 %v125_v5  ;;  %199 = vmatpush.msrb.mxu3 %v126_v4  ;;  %v1163_v63 = vld [vmem:[%s1391_s4 + $0x28] sm:$0xff]  ;;  %v1172_v0 = vld [vmem:[%s1391_s4 + $0x20] sm:$0xff] }
   0x9   :  { %147 = vmatpush.msra.mxu1 %v124_v6  ;;  %253 = vmatpush.msrb.mxu2 %v126_v4 }
   0xa   :  { %148 = vmatmul.f32.vlgmr.msra.gmra.mxu1 %v992_v7  ;;  %174 = vmatpush.msra.mxu0 %v124_v6 }
   0xb   :  { %200 = vmatpush.msrb.mxu3 %v125_v5  ;;  %225 = vmatpush.msrb.mxu1 %v127_v3 }
   0xc   :  { %254 = vmatpush.msrb.mxu2 %v125_v5  ;;  %900 = vmatmul.msk.f32.vlgmr.msra.gmra.mxu3 %vm49_vm0, %v41_v16 }
   0xd   :  { %201 = vmatpush.msrb.mxu3 %v124_v6  ;;  %226 = vmatpush.msrb.mxu1 %v126_v4 }
   0xe   :  { %255 = vmatpush.msrb.mxu2 %v124_v6 }
   0xf   :  { %227 = vmatpush.msrb.mxu1 %v125_v5  ;;  %895 = vmatmul.msk.f32.gmra.mxu2 %vm49_vm0, %v36_v8 }
  0x10   :  { %333 = vmatpush.msra.mxu2 %v127_v3  ;;  %279 = vmatpush.msra.mxu3 %v127_v3 }
  0x11   :  { %228 = vmatpush.msrb.mxu1 %v124_v6 }
  0x12   :  { %334 = vmatpush.msra.mxu2 %v126_v4  ;;  %280 = vmatpush.msra.mxu3 %v126_v4 }
  0x13   :  { %306 = vmatpush.msra.mxu1 %v127_v3 }
  0x14   :  { %335 = vmatpush.msra.mxu2 %v125_v5  ;;  %281 = vmatpush.msra.mxu3 %v125_v5 }
  0x15   :  { %307 = vmatpush.msra.mxu1 %v126_v4  ;;  %901 = vmatmul.msk.f32.gmra.mxu3 %vm49_vm0, %v42_v20  ;;  %v1179_v4 = vld [vmem:[%s1392_s5 + $0x1] ss:$0 sm:$0xff]  ;;  %v1214_v20 = vld [vmem:[%s1395_s6 + $0x10] sm:$0xff] }
  0x16   :  { %336 = vmatpush.msra.mxu2 %v124_v6  ;;  %282 = vmatpush.msra.mxu3 %v124_v6 }
  0x17   :  { %308 = vmatpush.msra.mxu1 %v125_v5  ;;  %896 = vmatmul.msk.f32.gmra.mxu2 %vm49_vm0, %v37_v17 }
  0x19   :  { %309 = vmatpush.msra.mxu1 %v124_v6 }
  0x1f   :  { %897 = vmatmul.msk.f32.gmra.mxu2 %vm49_vm0, %v38_v29 }
  0x27   :  { %898 = vmatmul.msk.f32.gmra.mxu2 %vm49_vm0, %v39_v36 }
  0x2f   :  { %899 = vmatmul.msk.f32.gmra.mxu2 %vm49_vm0, %v40_v39 }
  0x87   :  { %v149_v12 = vpop.f32.mrf.mxu1 }
  0x88   :  { %v91_v10 = vpop.f32.mrf.mxu2 }
  0x89   :  { %v92_v11 = vadd.f32 %v1079_v9, %v91_v10  ;;  %v993_v10 = vmov 0  }
  0x8a   :  { %953 = vset.pattern.permute.xlu0 %v993_v10  ;;  %954 = vset.pattern.permute.xlu1 %v993_v10 }
  0x8b   :  { %116 = vst.msk [vmem:[#allocation2] sm:$0xff] %vm115_vm1, %v92_v11  ;;  %955 = vset.pattern.permute.xlu2 %v993_v10 }
  0x8f   :  { %v109_v25 = vpop.f32.mrf.mxu3 }
  0x90   :  { %v110_v27 = vadd.f32 %v1079_v9, %v109_v25 }
  0x92   :  { %v128_v13 = vld [vmem:[#allocation2] sm:$0xff]  ;;  %v94_v18 = vpop.f32.mrf.mxu2  ;;  %122 = vst.msk [vmem:[#allocation2 + $0x30] sm:$0xff] %vm115_vm1, %v110_v27 }
  0x93   :  { %v152_v14 = vadd.f32 %v149_v12, %v128_v13  ;;  %v95_v19 = vadd.f32 %v1079_v9, %v94_v18 }
  0x95   :  { %960 = vtanh.f32 %v152_v14  ;;  %117 = vst.msk [vmem:[#allocation2 + $0x8] sm:$0xff] %vm115_vm1, %v95_v19  ;;  %v1209_v19 = vld [vmem:[%s1395_s6 + $0x18] sm:$0xff] }
  0x96   :  { %760 = vmatpush.msrb.mxu0 %v1209_v19 }
  0x98   :  { %v112_v30 = vpop.f32.mrf.mxu3  ;;  %761 = vmatpush.msrb.mxu0 %v1214_v20 }
  0x99   :  { %v113_v31 = vadd.f32 %v1079_v9, %v112_v30 }
  0x9a   :  { %v97_v26 = vpop.f32.mrf.mxu2 }
  0x9b   :  { %v961_v15 = vpop.eup %960  ;;  %v98_v28 = vadd.f32 %v1079_v9, %v97_v26  ;;  %123 = vst.msk [vmem:[#allocation2 + $0x38] sm:$0xff] %vm115_vm1, %v113_v31 }
  0x9c   :  { %154 = vst.msk [vmem:[#allocation2] sm:$0xff] %vm115_vm1, %v961_v15  ;;  %902 = vmatmul.msk.f32.vlgmr.msra.gmra.mxu0 %vm115_vm1, %v961_v15  ;;  %v155_v21 = vld [vmem:[#allocation2 + $0x8] sm:$0xff] }
  0x9d   :  { %118 = vst.msk [vmem:[#allocation2 + $0x10] sm:$0xff] %vm115_vm1, %v98_v28 }
  0xa2   :  { %v100_v37 = vpop.f32.mrf.mxu2  ;;  %v317_v39 = vld [vmem:[#allocation2 + $0x38] sm:$0xff] }
  0xa3   :  { %v101_v38 = vadd.f32 %v1079_v9, %v100_v37  ;;  %v344_v56 = vld [vmem:[#allocation2] sm:$0xff] }
  0xa4   :  { %v182_v32 = vld [vmem:[#allocation2 + $0x10] sm:$0xff] }
  0xa5   :  { %119 = vst.msk [vmem:[#allocation2 + $0x18] sm:$0xff] %vm115_vm1, %v101_v38  ;;  %v662_v38 = vld [vmem:[%s1394_s1 + $0x10] sm:$0xff] }
  0xa6   :  { %680 = vperm.xlu1 %954, %v662_v38   ;;  %v666_v38 = vld [vmem:[%s1394_s1 + $0x30] sm:$0xff] }
  0xaa   :  { %v103_v44 = vpop.f32.mrf.mxu2 }
  0xab   :  { %v104_v45 = vadd.f32 %v1079_v9, %v103_v44 }
  0xac   :  { %v209_v40 = vld [vmem:[#allocation2 + $0x18] sm:$0xff] }
  0xad   :  { %120 = vst.msk [vmem:[#allocation2 + $0x20] sm:$0xff] %vm115_vm1, %v104_v45 }
  0xb2   :  { %v106_v46 = vpop.f32.mrf.mxu2 }
  0xb3   :  { %v107_v47 = vadd.f32 %v1079_v9, %v106_v46  ;;  %v660_v9 = vld [vmem:[%s1394_s1] sm:$0xff] }
  0xb4   :  { %v236_v52 = vld [vmem:[#allocation2 + $0x20] sm:$0xff]  ;;  %670 = vperm.xlu0 %953, %v660_v9  }
  0xb5   :  { %121 = vst.msk [vmem:[#allocation2 + $0x28] sm:$0xff] %vm115_vm1, %v107_v47 }
  0xbc   :  { %v263_v1 = vld [vmem:[#allocation2 + $0x28] sm:$0xff] }
 0x118   :  { %v681_v10 = vpop.permute.xlu1 %680 }
 0x119   :  { %v176_v22 = vpop.f32.mrf.mxu0 }
 0x11a   :  { %v179_v23 = vadd.f32 %v176_v22, %v155_v21  ;;  %v1220_v21 = vld [vmem:[%s1395_s6 + $0x8] sm:$0xff]  ;;  %v1227_v22 = vld [vmem:[%s1395_s6] sm:$0xff] }
 0x11b   :  { %762 = vmatpush.msrb.mxu0 %v1220_v21 }
 0x11c   :  { %962 = vtanh.f32 %v179_v23  ;;  %v661_v23 = vld [vmem:[%s1394_s1 + $0x8] sm:$0xff] }
 0x11d   :  { %763 = vmatpush.msrb.mxu0 %v1227_v22  ;;  %675 = vperm.xlu0 %953, %v661_v23  }
 0x122   :  { %v963_v24 = vpop.eup %962 }
 0x123   :  { %181 = vst.msk [vmem:[#allocation2 + $0x8] sm:$0xff] %vm115_vm1, %v963_v24  ;;  %903 = vmatmul.msk.f32.vlgmr.msrb.gmra.mxu3 %vm115_vm1, %v963_v24  ;;  %v290_v24 = vld [vmem:[#allocation2 + $0x30] sm:$0xff] }
 0x124   :  { %397 = vmatpush.msrb.mxu3 %v355_v48 }
 0x125   :  { %700 = vperm.xlu0 %953, %v666_v38  }
 0x126   :  { %398 = vmatpush.msrb.mxu3 %v354_v49 }
 0x128   :  { %399 = vmatpush.msrb.mxu3 %v353_v50 }
 0x12a   :  { %400 = vmatpush.msrb.mxu3 %v352_v51  ;;  %v345_v57 = vld [vmem:[#allocation2 + $0x8] sm:$0xff] }
 0x1a6   :  { %v203_v33 = vpop.f32.mrf.mxu3 }
 0x1a7   :  { %v206_v34 = vadd.f32 %v203_v33, %v182_v32 }
 0x1a9   :  { %964 = vtanh.f32 %v206_v34 }
 0x1af   :  { %v965_v35 = vpop.eup %964 }
 0x1b0   :  { %208 = vst.msk [vmem:[#allocation2 + $0x10] sm:$0xff] %vm115_vm1, %v965_v35  ;;  %904 = vmatmul.msk.f32.vlgmr.msrb.gmra.mxu1 %vm115_vm1, %v965_v35  ;;  %v671_v35 = vpop.permute.xlu0 %670 }
 0x1b1   :  { %452 = vmatpush.msrb.mxu1 %v1151_v61 }
 0x1b3   :  { %453 = vmatpush.msrb.mxu1 %v1157_v62 }
 0x1b5   :  { %454 = vmatpush.msrb.mxu1 %v1163_v63 }
 0x1b7   :  { %v346_v58 = vld [vmem:[#allocation2 + $0x10] sm:$0xff]  ;;  %455 = vmatpush.msrb.mxu1 %v1172_v0 }
 0x1b8   :  { %v676_v50 = vpop.permute.xlu0 %675 }
 0x22d   :  { %v230_v41 = vpop.f32.mrf.mxu1 }
 0x22e   :  { %v233_v42 = vadd.f32 %v230_v41, %v209_v40 }
 0x230   :  { %966 = vtanh.f32 %v233_v42 }
 0x236   :  { %v967_v43 = vpop.eup %966 }
 0x237   :  { %235 = vst.msk [vmem:[#allocation2 + $0x18] sm:$0xff] %vm115_vm1, %v967_v43  ;;  %905 = vmatmul.msk.f32.vlgmr.msrb.gmra.mxu2 %vm115_vm1, %v967_v43 }
 0x238   :  { %479 = vmatpush.msrb.mxu2 %v1151_v61 }
 0x23a   :  { %480 = vmatpush.msrb.mxu2 %v1157_v62 }
 0x23c   :  { %481 = vmatpush.msrb.mxu2 %v1163_v63 }
 0x23e   :  { %v347_v59 = vld [vmem:[#allocation2 + $0x18] sm:$0xff]  ;;  %482 = vmatpush.msrb.mxu2 %v1172_v0 }
 0x2ba   :  { %v257_v53 = vpop.f32.mrf.mxu2 }
 0x2bb   :  { %v260_v54 = vadd.f32 %v257_v53, %v236_v52  ;;  %v810_v53 = vld [vmem:[%s1397_s8 + $0x28] sm:$0xff] }
 0x2bc   :  { %850 = vmatpush.msra.mxu0 %v810_v53 }
 0x2bd   :  { %968 = vtanh.f32 %v260_v54  ;;  %v809_v54 = vld [vmem:[%s1397_s8 + $0x20] sm:$0xff] }
 0x2be   :  { %851 = vmatpush.msra.mxu0 %v809_v54 }
 0x2c3   :  { %v969_v55 = vpop.eup %968 }
 0x2c4   :  { %262 = vst.msk [vmem:[#allocation2 + $0x20] sm:$0xff] %vm115_vm1, %v969_v55  ;;  %906 = vmatmul.msk.f32.vlgmr.msra.gmra.mxu3 %vm115_vm1, %v969_v55  ;;  %v808_v55 = vld [vmem:[%s1397_s8 + $0x18] sm:$0xff] }
 0x2c5   :  { %852 = vmatpush.msra.mxu0 %v808_v55 }
 0x2cb   :  { %v348_v60 = vld [vmem:[#allocation2 + $0x20] sm:$0xff] }
 0x2cc   :  { %910 = vmatmul.msk.f32.vlgmr.msrb.gmra.mxu3 %vm115_vm1, %v344_v56  ;;  %v807_v56 = vld [vmem:[%s1397_s8 + $0x10] sm:$0xff] }
 0x2cd   :  { %853 = vmatpush.msra.mxu0 %v807_v56 }
 0x2d4   :  { %911 = vmatmul.msk.f32.gmra.mxu3 %vm115_vm1, %v345_v57  ;;  %v806_v57 = vld [vmem:[%s1397_s8 + $0x8] sm:$0xff] }
 0x2d5   :  { %854 = vmatpush.msra.mxu0 %v806_v57 }
 0x2dc   :  { %912 = vmatmul.msk.f32.gmra.mxu3 %vm115_vm1, %v346_v58  ;;  %v805_v58 = vld [vmem:[%s1397_s8] sm:$0xff] }
 0x2dd   :  { %855 = vmatpush.msra.mxu0 %v805_v58  ;;  %v701_v58 = vpop.permute.xlu0 %700 }
 0x2e4   :  { %913 = vmatmul.msk.f32.gmra.mxu3 %vm115_vm1, %v347_v59 }
 0x2ec   :  { %914 = vmatmul.msk.f32.gmra.mxu3 %vm115_vm1, %v348_v60 }
 0x347   :  { %v284_v2 = vpop.f32.mrf.mxu3 }
 0x348   :  { %v287_v3 = vadd.f32 %v284_v2, %v263_v1  ;;  %v663_v2 = vld [vmem:[%s1394_s1 + $0x18] sm:$0xff] }
 0x349   :  { %685 = vperm.xlu1 %954, %v663_v2  }
 0x34a   :  { %970 = vtanh.f32 %v287_v3 }
 0x34f   :  { %v402_v5 = vpop.f32.mrf.mxu3 }
 0x350   :  { %v971_v6 = vpop.eup %970  ;;  %v403_v8 = vadd.f32 %v1179_v4, %v402_v5 }
 0x351   :  { %289 = vst.msk [vmem:[#allocation2 + $0x28] sm:$0xff] %vm115_vm1, %v971_v6  ;;  %907 = vmatmul.msk.f32.vlgmr.msra.gmra.mxu1 %vm115_vm1, %v971_v6 }
 0x352   :  { %426 = vst.msk [vmem:[#allocation2] sm:$0xff] %vm115_vm1, %v403_v8  ;;  %506 = vmatpush.msra.mxu1 %v1151_v61  ;;  %v1293_v8 = vld [vmem:[%s1396_s7] ss:$0 sm:$0xff] }
 0x354   :  { %507 = vmatpush.msra.mxu1 %v1157_v62 }
 0x356   :  { %508 = vmatpush.msra.mxu1 %v1163_v63 }
 0x357   :  { %v405_v11 = vpop.f32.mrf.mxu3 }
 0x358   :  { %v406_v12 = vadd.f32 %v1179_v4, %v405_v11  ;;  %v349_v13 = vld [vmem:[#allocation2 + $0x28] sm:$0xff]  ;;  %509 = vmatpush.msra.mxu1 %v1172_v0 }
 0x359   :  { %915 = vmatmul.msk.f32.gmra.mxu3 %vm115_vm1, %v349_v13  ;;  %456 = vmatmul.f32.vlgmr.msrb.gmra.mxu1 %v992_v7  ;;  %v439_v27 = vld [vmem:[#allocation2] sm:$0xff] }
 0x35a   :  { %427 = vst.msk [vmem:[#allocation2 + $0x8] sm:$0xff] %vm115_vm1, %v406_v12  ;;  %560 = vmatpush.msrb.mxu1 %v1151_v61 }
 0x35c   :  { %561 = vmatpush.msrb.mxu1 %v1157_v62 }
 0x35e   :  { %562 = vmatpush.msrb.mxu1 %v1163_v63 }
 0x35f   :  { %v408_v14 = vpop.f32.mrf.mxu3 }
 0x360   :  { %v409_v15 = vadd.f32 %v1179_v4, %v408_v14  ;;  %563 = vmatpush.msrb.mxu1 %v1172_v0 }
 0x361   :  { %v463_v43 = vld [vmem:[#allocation2 + $0x8] sm:$0xff] }
 0x362   :  { %428 = vst.msk [vmem:[#allocation2 + $0x10] sm:$0xff] %vm115_vm1, %v409_v15 }
 0x367   :  { %v411_v16 = vpop.f32.mrf.mxu3 }
 0x368   :  { %v412_v17 = vadd.f32 %v1179_v4, %v411_v16 }
 0x369   :  { %v490_v59 = vld [vmem:[#allocation2 + $0x10] sm:$0xff] }
 0x36a   :  { %429 = vst.msk [vmem:[#allocation2 + $0x18] sm:$0xff] %vm115_vm1, %v412_v17 }
 0x36f   :  { %v414_v7 = vpop.f32.mrf.mxu3 }
 0x370   :  { %v415_v18 = vadd.f32 %v1179_v4, %v414_v7 }
 0x372   :  { %430 = vst.msk [vmem:[#allocation2 + $0x20] sm:$0xff] %vm115_vm1, %v415_v18 }
 0x3ce   :  { %v311_v25 = vpop.f32.mrf.mxu1 }
 0x3cf   :  { %v314_v26 = vadd.f32 %v311_v25, %v290_v24 }
 0x3d1   :  { %972 = vtanh.f32 %v314_v26 }
 0x3d6   :  { %v457_v28 = vpop.f32.mrf.mxu1 }
 0x3d7   :  { %v973_v29 = vpop.eup %972  ;;  %v460_v30 = vadd.f32 %v457_v28, %v439_v27  ;;  %v1309_v27 = vld [vmem:[%s1398_s9] ss:$0 sm:$0xff] }
 0x3d8   :  { %316 = vst.msk [vmem:[#allocation2 + $0x30] sm:$0xff] %vm115_vm1, %v973_v29  ;;  %908 = vmatmul.msk.f32.vlgmr.msra.gmra.mxu2 %vm115_vm1, %v973_v29 }
 0x3d9   :  { %974 = vtanh.f32 %v460_v30  ;;  %533 = vmatpush.msra.mxu2 %v1151_v61 }
 0x3db   :  { %534 = vmatpush.msra.mxu2 %v1157_v62 }
 0x3dc   :  { %v417_v31 = vpop.f32.mrf.mxu3 }
 0x3dd   :  { %v418_v32 = vadd.f32 %v1179_v4, %v417_v31  ;;  %535 = vmatpush.msra.mxu2 %v1163_v63 }
 0x3df   :  { %v975_v33 = vpop.eup %974  ;;  %431 = vst.msk [vmem:[#allocation2 + $0x28] sm:$0xff] %vm115_vm1, %v418_v32  ;;  %v350_v34 = vld [vmem:[#allocation2 + $0x30] sm:$0xff]  ;;  %536 = vmatpush.msra.mxu2 %v1172_v0 }
 0x3e0   :  { %462 = vst.msk [vmem:[#allocation2] sm:$0xff] %vm115_vm1, %v975_v33  ;;  %916 = vmatmul.msk.f32.gmra.mxu3 %vm115_vm1, %v350_v34  ;;  %922 = vmatmul.msk.f32.vlgmr.msrb.gmra.mxu2 %vm115_vm1, %v975_v33 }
 0x3e1   :  { %587 = vmatpush.msrb.mxu2 %v1151_v61 }
 0x3e3   :  { %588 = vmatpush.msrb.mxu2 %v1157_v62 }
 0x3e5   :  { %589 = vmatpush.msrb.mxu2 %v1163_v63 }
 0x3e7   :  { %v652_v36 = vld [vmem:[#allocation2] sm:$0xff]  ;;  %590 = vmatpush.msrb.mxu2 %v1172_v0 }
 0x3e8   :  { %v708_v37 = vmul.f32 %v671_v35, %v652_v36  ;;  %v571_v35 = vld [vmem:[#allocation2 + $0x28] sm:$0xff] }
 0x3ea   :  { %929 = vmatmul.msk.f32.vlgmr.msrb.gmra.mxu0 %vm115_vm1, %v708_v37 }
 0x45b   :  { %v338_v40 = vpop.f32.mrf.mxu2 }
 0x45c   :  { %v341_v41 = vadd.f32 %v338_v40, %v317_v39  ;;  %v686_v40 = vpop.permute.xlu1 %685 }
 0x45e   :  { %976 = vtanh.f32 %v341_v41 }
 0x463   :  { %v420_v42 = vpop.f32.mrf.mxu3  ;;  %v484_v44 = vpop.f32.mrf.mxu2 }
 0x464   :  { %v977_v45 = vpop.eup %976  ;;  %v421_v46 = vadd.f32 %v1179_v4, %v420_v42  ;;  %v487_v47 = vadd.f32 %v484_v44, %v463_v43 }
 0x465   :  { %343 = vst.msk [vmem:[#allocation2 + $0x38] sm:$0xff] %vm115_vm1, %v977_v45 }
 0x466   :  { %432 = vst.msk [vmem:[#allocation2 + $0x30] sm:$0xff] %vm115_vm1, %v421_v46  ;;  %978 = vtanh.f32 %v487_v47 }
 0x467   :  { %v765_v9 = vpop.f32.mrf.mxu0 }
 0x468   :  { %v766_v11 = vadd.f32 %v1293_v8, %v765_v9 }
 0x46c   :  { %v979_v48 = vpop.eup %978  ;;  %v351_v49 = vld [vmem:[#allocation2 + $0x38] sm:$0xff] }
 0x46d   :  { %489 = vst.msk [vmem:[#allocation2 + $0x8] sm:$0xff] %vm115_vm1, %v979_v48  ;;  %917 = vmatmul.msk.f32.gmra.mxu3 %vm115_vm1, %v351_v49  ;;  %923 = vmatmul.msk.f32.vlgmr.msra.gmra.mxu1 %vm115_vm1, %v979_v48  ;;  %v667_v49 = vld [vmem:[%s1394_s1 + $0x38] sm:$0xff] }
 0x46e   :  { %614 = vmatpush.msra.mxu1 %v1151_v61  ;;  %705 = vperm.xlu1 %954, %v667_v49  }
 0x470   :  { %615 = vmatpush.msra.mxu1 %v1157_v62 }
 0x472   :  { %616 = vmatpush.msra.mxu1 %v1163_v63 }
 0x474   :  { %v653_v51 = vld [vmem:[#allocation2 + $0x8] sm:$0xff]  ;;  %617 = vmatpush.msra.mxu1 %v1172_v0 }
 0x475   :  { %v709_v52 = vmul.f32 %v676_v50, %v653_v51  ;;  %v598_v50 = vld [vmem:[#allocation2 + $0x30] sm:$0xff] }
 0x477   :  { %930 = vmatmul.msk.f32.gmra.mxu0 %vm115_vm1, %v709_v52 }
 0x4ea   :  { %v511_v60 = vpop.f32.mrf.mxu1 }
 0x4eb   :  { %v514_v1 = vadd.f32 %v511_v60, %v490_v59 }
 0x4ed   :  { %980 = vtanh.f32 %v514_v1 }
 0x4f0   :  { %v423_v3 = vpop.f32.mrf.mxu3 }
 0x4f1   :  { %v424_v5 = vadd.f32 %v1179_v4, %v423_v3 }
 0x4f3   :  { %v981_v6 = vpop.eup %980  ;;  %433 = vst.msk [vmem:[#allocation2 + $0x38] sm:$0xff] %vm115_vm1, %v424_v5 }
 0x4f4   :  { %516 = vst.msk [vmem:[#allocation2 + $0x10] sm:$0xff] %vm115_vm1, %v981_v6  ;;  %924 = vmatmul.msk.f32.vlgmr.msra.gmra.mxu2 %vm115_vm1, %v981_v6  ;;  %v768_v13 = vpop.f32.mrf.mxu0 }
 0x4f5   :  { %641 = vmatpush.msra.mxu2 %v1151_v61  ;;  %v789_v61 = vmul.f32 0.01, %v766_v11  ;;  %v769_v14 = vadd.f32 %v1293_v8, %v768_v13 }
 0x4f7   :  { %642 = vmatpush.msra.mxu2 %v1157_v62  ;;  %v797_v62 = vmax.f32 %v766_v11, %v789_v61  ;;  %v790_v15 = vmul.f32 0.01, %v769_v14 }
 0x4f9   :  { %643 = vmatpush.msra.mxu2 %v1163_v63  ;;  %v798_v16 = vmax.f32 %v769_v14, %v790_v15  ;;  %v664_v63 = vld [vmem:[%s1394_s1 + $0x20] sm:$0xff] }
 0x4fa   :  { %690 = vperm.xlu2 %955, %v664_v63   ;;  %v625_v61 = vld [vmem:[#allocation2 + $0x38] sm:$0xff] }
 0x4fb   :  { %v654_v4 = vld [vmem:[#allocation2 + $0x10] sm:$0xff]  ;;  %644 = vmatpush.msra.mxu2 %v1172_v0  ;;  %v517_v0 = vld [vmem:[#allocation2 + $0x18] sm:$0xff] }
 0x4fc   :  { %v710_v12 = vmul.f32 %v681_v10, %v654_v4 }
 0x4fe   :  { %931 = vmatmul.msk.f32.gmra.mxu0 %vm115_vm1, %v710_v12 }
 0x506   :  { %937 = vmatmul.msk.f32.vlgmr.msra.gmra.mxu0 %vm815_vm2, %v797_v62 }
 0x50e   :  { %938 = vmatmul.msk.f32.gmra.mxu0 %vm815_vm2, %v798_v16 }
 0x554   :  { %v691_v43 = vpop.permute.xlu2 %690 }
 0x577   :  { %v538_v17 = vpop.f32.mrf.mxu2 }
 0x578   :  { %v541_v7 = vadd.f32 %v538_v17, %v517_v0 }
 0x57a   :  { %982 = vtanh.f32 %v541_v7 }
 0x57b   :  { %v771_v18 = vpop.f32.mrf.mxu0 }
 0x57c   :  { %v772_v23 = vadd.f32 %v1293_v8, %v771_v18 }
 0x57e   :  { %v791_v24 = vmul.f32 0.01, %v772_v23 }
 0x580   :  { %v983_v25 = vpop.eup %982  ;;  %v799_v26 = vmax.f32 %v772_v23, %v791_v24  ;;  %v706_v24 = vpop.permute.xlu1 %705 }
 0x581   :  { %543 = vst.msk [vmem:[#allocation2 + $0x18] sm:$0xff] %vm115_vm1, %v983_v25  ;;  %925 = vmatmul.msk.f32.vlgmr.msrb.gmra.mxu1 %vm115_vm1, %v983_v25 }
 0x582   :  { %939 = vmatmul.msk.f32.gmra.mxu0 %vm815_vm2, %v799_v26  ;;  %947 = vmatpush.msrb.mxu1 %v1209_v19  ;;  %v665_v19 = vld [vmem:[%s1394_s1 + $0x28] sm:$0xff] }
 0x583   :  { %v857_v28 = vpop.f32.mrf.mxu0  ;;  %695 = vperm.xlu2 %955, %v665_v19  }
 0x584   :  { %v858_v29 = vadd.f32 %v1309_v27, %v857_v28  ;;  %948 = vmatpush.msrb.mxu1 %v1214_v20  ;;  %v544_v20 = vld [vmem:[#allocation2 + $0x20] sm:$0xff] }
 0x586   :  { %882 = vst.msk [vmem:[%s1399_s10] sm:$0xff] %vm881_vm3, %v858_v29  ;;  %949 = vmatpush.msrb.mxu1 %v1220_v21 }
 0x588   :  { %950 = vmatpush.msrb.mxu1 %v1227_v22  ;;  %v655_v41 = vld [vmem:[#allocation2 + $0x18] sm:$0xff] }
 0x589   :  { %v711_v42 = vmul.f32 %v686_v40, %v655_v41 }
 0x58b   :  { %v860_v30 = vpop.f32.mrf.mxu0 }
 0x58c   :  { %v861_v31 = vadd.f32 %v1309_v27, %v860_v30 }
 0x58e   :  { %883 = vst.msk [vmem:[%s1399_s10 + $0x8] sm:$0xff] %vm881_vm3, %v861_v31 }
 0x5dd   :  { %v696_v46 = vpop.permute.xlu2 %695 }
 0x5fe   :  { %v565_v32 = vpop.f32.mrf.mxu1 }
 0x5ff   :  { %v568_v33 = vadd.f32 %v565_v32, %v544_v20  ;;  %v863_v34 = vpop.f32.mrf.mxu0 }
 0x600   :  { %v864_v21 = vadd.f32 %v1309_v27, %v863_v34 }
 0x601   :  { %984 = vtanh.f32 %v568_v33 }
 0x602   :  { %884 = vst.msk [vmem:[%s1399_s10 + $0x10] sm:$0xff] %vm881_vm3, %v864_v21 }
 0x607   :  { %v985_v22 = vpop.eup %984 }
 0x608   :  { %570 = vst.msk [vmem:[#allocation2 + $0x20] sm:$0xff] %vm115_vm1, %v985_v22  ;;  %926 = vmatmul.msk.f32.vlgmr.msrb.gmra.mxu2 %vm115_vm1, %v985_v22 }
 0x60f   :  { %v656_v44 = vld [vmem:[#allocation2 + $0x20] sm:$0xff] }
 0x610   :  { %v712_v45 = vmul.f32 %v691_v43, %v656_v44 }
 0x68b   :  { %v592_v36 = vpop.f32.mrf.mxu2 }
 0x68c   :  { %v595_v37 = vadd.f32 %v592_v36, %v571_v35 }
 0x68e   :  { %986 = vtanh.f32 %v595_v37 }
 0x694   :  { %v987_v39 = vpop.eup %986 }
 0x695   :  { %597 = vst.msk [vmem:[#allocation2 + $0x28] sm:$0xff] %vm115_vm1, %v987_v39  ;;  %927 = vmatmul.msk.f32.vlgmr.msra.gmra.mxu1 %vm115_vm1, %v987_v39 }
 0x69c   :  { %v657_v47 = vld [vmem:[#allocation2 + $0x28] sm:$0xff] }
 0x69d   :  { %932 = vmatmul.msk.f32.vlgmr.msrb.gmra.mxu1 %vm115_vm1, %v711_v42  ;;  %v713_v48 = vmul.f32 %v696_v46, %v657_v47 }
 0x6a5   :  { %933 = vmatmul.msk.f32.gmra.mxu1 %vm115_vm1, %v712_v45 }
 0x6ad   :  { %934 = vmatmul.msk.f32.gmra.mxu1 %vm115_vm1, %v713_v48 }
 0x712   :  { %v619_v51 = vpop.f32.mrf.mxu1 }
 0x713   :  { %v622_v52 = vadd.f32 %v619_v51, %v598_v50 }
 0x715   :  { %988 = vtanh.f32 %v622_v52 }
 0x71a   :  { %v774_v53 = vpop.f32.mrf.mxu1 }
 0x71b   :  { %v989_v54 = vpop.eup %988  ;;  %v775_v55 = vadd.f32 %v1293_v8, %v774_v53 }
 0x71c   :  { %624 = vst.msk [vmem:[#allocation2 + $0x30] sm:$0xff] %vm115_vm1, %v989_v54  ;;  %928 = vmatmul.msk.f32.vlgmr.msra.gmra.mxu2 %vm115_vm1, %v989_v54 }
 0x71d   :  { %v792_v56 = vmul.f32 0.01, %v775_v55 }
 0x71f   :  { %v800_v57 = vmax.f32 %v775_v55, %v792_v56 }
 0x721   :  { %940 = vmatmul.msk.f32.gmra.mxu0 %vm815_vm2, %v800_v57 }
 0x722   :  { %v777_v59 = vpop.f32.mrf.mxu1 }
 0x723   :  { %v778_v60 = vadd.f32 %v1293_v8, %v777_v59  ;;  %v658_v1 = vld [vmem:[#allocation2 + $0x30] sm:$0xff] }
 0x724   :  { %v714_v2 = vmul.f32 %v701_v58, %v658_v1 }
 0x725   :  { %v793_v3 = vmul.f32 0.01, %v778_v60 }
 0x726   :  { %935 = vmatmul.msk.f32.gmra.mxu1 %vm115_vm1, %v714_v2 }
 0x727   :  { %v801_v5 = vmax.f32 %v778_v60, %v793_v3 }
 0x729   :  { %941 = vmatmul.msk.f32.gmra.mxu0 %vm815_vm2, %v801_v5 }
 0x72a   :  { %v780_v6 = vpop.f32.mrf.mxu1 }
 0x72b   :  { %v781_v9 = vadd.f32 %v1293_v8, %v780_v6 }
 0x72d   :  { %v794_v10 = vmul.f32 0.01, %v781_v9 }
 0x72f   :  { %v802_v4 = vmax.f32 %v781_v9, %v794_v10 }
 0x731   :  { %942 = vmatmul.msk.f32.gmra.mxu0 %vm815_vm2, %v802_v4 }
 0x79e   :  { %v866_v11 = vpop.f32.mrf.mxu0 }
 0x79f   :  { %v867_v12 = vadd.f32 %v1309_v27, %v866_v11  ;;  %v646_v13 = vpop.f32.mrf.mxu2 }
 0x7a0   :  { %v649_v62 = vadd.f32 %v646_v13, %v625_v61 }
 0x7a1   :  { %885 = vst.msk [vmem:[%s1399_s10 + $0x18] sm:$0xff] %vm881_vm3, %v867_v12 }
 0x7a2   :  { %990 = vtanh.f32 %v649_v62 }
 0x7a3   :  { %v783_v14 = vpop.f32.mrf.mxu1 }
 0x7a4   :  { %v784_v15 = vadd.f32 %v1293_v8, %v783_v14 }
 0x7a6   :  { %v795_v16 = vmul.f32 0.01, %v784_v15  ;;  %v869_v63 = vpop.f32.mrf.mxu0 }
 0x7a7   :  { %v870_v0 = vadd.f32 %v1309_v27, %v869_v63 }
 0x7a8   :  { %v991_v17 = vpop.eup %990  ;;  %v803_v7 = vmax.f32 %v784_v15, %v795_v16 }
 0x7a9   :  { %651 = vst.msk [vmem:[#allocation2 + $0x38] sm:$0xff] %vm115_vm1, %v991_v17 }
 0x7aa   :  { %886 = vst.msk [vmem:[%s1399_s10 + $0x20] sm:$0xff] %vm881_vm3, %v870_v0  ;;  %943 = vmatmul.msk.f32.gmra.mxu0 %vm815_vm2, %v803_v7 }
 0x7ae   :  { %v872_v18 = vpop.f32.mrf.mxu0 }
 0x7af   :  { %v873_v23 = vadd.f32 %v1309_v27, %v872_v18 }
 0x7b0   :  { %v659_v25 = vld [vmem:[#allocation2 + $0x38] sm:$0xff] }
 0x7b1   :  { %887 = vst.msk [vmem:[%s1399_s10 + $0x28] sm:$0xff] %vm881_vm3, %v873_v23  ;;  %v715_v26 = vmul.f32 %v706_v24, %v659_v25 }
 0x7b3   :  { %936 = vmatmul.msk.f32.gmra.mxu1 %vm115_vm1, %v715_v26 }
 0x827   :  { %v875_v28 = vpop.f32.mrf.mxu0 }
 0x828   :  { %v876_v29 = vadd.f32 %v1309_v27, %v875_v28 }
 0x82a   :  { %888 = vst.msk [vmem:[%s1399_s10 + $0x30] sm:$0xff] %vm881_vm3, %v876_v29 }
 0x830   :  { %v786_v30 = vpop.f32.mrf.mxu1 }
 0x831   :  { %v787_v31 = vadd.f32 %v1293_v8, %v786_v30 }
 0x833   :  { %v796_v19 = vmul.f32 0.01, %v787_v31 }
 0x835   :  { %v804_v20 = vmax.f32 %v787_v31, %v796_v19 }
 0x837   :  { %944 = vmatmul.msk.f32.gmra.mxu0 %vm815_vm2, %v804_v20 }
 0x8b4   :  { %v878_v32 = vpop.f32.mrf.mxu0 }
 0x8b5   :  { %v879_v33 = vadd.f32 %v1309_v27, %v878_v32 }
 0x8b7   :  { %889 = vst.msk [vmem:[%s1399_s10 + $0x38] sm:$0xff] %vm881_vm3, %v879_v33 }

</bundles_post_ra>
